<compile_context>
chip_gen: v5e
topology: v5e:2x2
jax: 0.10.0
libtpu: 0.0.40
codegen_flags: <defaults>
</compile_context>

<pallas_src>
import functools

import jax
import jax.numpy as jnp
from jax import lax
from jax.experimental import pallas as pl
from jax.experimental.pallas import tpu as pltpu


# ---------------- Fused Pallas kernel ----------------

def moe_fused_kernel(x_ref, w_ref, b_ref, slab_ref, idx_ref, *,
                     top_k, out_dim, num_experts, eo, lane_pad, idx_width):
    """One batch tile: router + top-k + gating + all experts, one MXU dot.

    x_ref:    [tB, D]            (f32 or bf16)
    w_ref:    [D, eo + lane_pad] (f32 or bf16)  cols [0,eo): experts, [eo,eo+E): router
    b_ref:    [1, eo + lane_pad] f32
    slab_ref: [tB, eo + lane_pad] f32  cols [0,eo): gated relu expert outputs,
                                       cols [eo,eo+E): raw router logits, rest 0
    idx_ref:  [tB, idx_width] int32    first top_k cols: selected expert indices
    """
    tB = x_ref.shape[0]
    W = w_ref.shape[1]
    O = out_dim
    E = num_experts

    x = x_ref[...]

    # ---- Single lane-dense MXU call: all experts AND the router at once ----
    h = (jnp.dot(x, w_ref[...], preferred_element_type=jnp.float32)
         + b_ref[...])                                                # [tB, W] f32

    col = lax.broadcasted_iota(jnp.int32, (tB, W), 1)                 # [tB, W]
    is_expert_col = col < eo

    # Router logits live in the last `lane_pad` (128-aligned) lanes of the slab.
    logits_wide = h[:, eo:]                                           # [tB, lane_pad]
    lane = lax.broadcasted_iota(jnp.int32, (tB, lane_pad), 1)
    neg_big = jnp.finfo(jnp.float32).min
    work = jnp.where(lane < E, logits_wide, neg_big)

    # ---- Top-k routing + gate construction (VPU/XLU; E is tiny) ----
    # Ties break to the lowest expert index (matches lax.top_k; torch tie order
    # is unspecified).  TODO(synk): guard for non-finite logits if needed.
    gate = jnp.where(is_expert_col, 0.0, 1.0)       # logits columns pass through
    idx_out = jnp.full((tB, idx_width), -1, jnp.int32)
    idx_lane = lax.broadcasted_iota(jnp.int32, (tB, idx_width), 1)
    for k in range(top_k):
        m = jnp.max(work, axis=-1, keepdims=True)                     # [tB, 1]
        sel = jnp.min(jnp.where(work == m, lane, lane_pad),
                      axis=-1, keepdims=True)                         # [tB, 1] int32
        lo = sel * O                                                  # no int divide
        gate = gate + jnp.where((col >= lo) & (col < lo + O), m, 0.0)
        work = jnp.where(lane == sel, neg_big, work)
        idx_out = jnp.where(idx_lane == k, sel, idx_out)

    # ---- ReLU on expert columns only, gate, one unmasked lane-dense store ----
    val = jnp.where(is_expert_col, jnp.maximum(h, 0.0), h)
    slab_ref[...] = val * gate
    idx_ref[...] = idx_out


# ---------------- Wrapper ----------------

def moe_forward(x, w_router, b_router, w_experts, b_experts, *,
                top_k, mxu_dtype=jnp.float32):
    """
    x:         [B, D] float32
    w_router:  [D, E] float32
    b_router:  [1, E] float32
    w_experts: [E, D, O] float32
    b_experts: [E, 1, O] float32
    Returns (weighted_outputs [E,B,O], router_logits [B,E], topk_indices [B,top_k])
    """
    B, D = x.shape
    E = w_router.shape[1]
    O = w_experts.shape[2]
    EO = E * O
    LP = ((E + 127) // 128) * 128        # router columns padded to 128 lanes
    IDXW = 128                           # lane-dense index output, sliced below
    W = EO + LP

    if EO % 128 != 0:
        # TODO(synk): pad O (and strip in the wrapper) for non-128-multiple E*O.
        raise NotImplementedError("E*O must be a multiple of 128 for lane-dense stores")

    # Lane-dense fused slab: cols [0, EO) experts (w[d, e*O+o] = w_experts[e,d,o]),
    # cols [EO, EO+E) router, rest zero padding.
    w_expert_flat = jnp.transpose(w_experts, (1, 0, 2)).reshape(D, EO)
    w_router_pad = jnp.pad(w_router, ((0, 0), (0, LP - E)))
    w_slab = jnp.concatenate([w_expert_flat, w_router_pad], axis=1).astype(mxu_dtype)

    b_expert_flat = b_experts.reshape(1, EO)
    b_router_pad = jnp.pad(b_router, ((0, 0), (0, LP - E)))
    b_slab = jnp.concatenate([b_expert_flat, b_router_pad], axis=1).astype(jnp.float32)

    x_in = x.astype(mxu_dtype)           # cast in wrapper: halves x DMA when bf16

    tB = B if B <= 128 else 128          # batch tile (grid axis is 'parallel')
    assert B % tB == 0, "batch must be a multiple of the batch tile"
    grid = (B // tB,)

    kernel = functools.partial(
        moe_fused_kernel, top_k=top_k, out_dim=O, num_experts=E,
        eo=EO, lane_pad=LP, idx_width=IDXW)

    out_slab, idx_wide = pl.pallas_call(
        kernel,
        grid=grid,
        in_specs=[
            pl.BlockSpec((tB, D), lambda i: (i, 0)),
            pl.BlockSpec((D, W), lambda i: (0, 0)),
            pl.BlockSpec((1, W), lambda i: (0, 0)),
        ],
        out_specs=(
            pl.BlockSpec((tB, W), lambda i: (i, 0)),
            pl.BlockSpec((tB, IDXW), lambda i: (i, 0)),
        ),
        out_shape=(
            jax.ShapeDtypeStruct((B, W), jnp.float32),    # experts + logits slab
            jax.ShapeDtypeStruct((B, IDXW), jnp.int32),   # lane-dense top-k indices
        ),
        compiler_params=pltpu.CompilerParams(
            dimension_semantics=("parallel",),            # v7x: 2 TCs split batch tiles
            vmem_limit_bytes=32 * 1024 * 1024,            # explicit; safe on v5e/v6e/v7x
        ),
    )(x_in, w_slab, b_slab)

    # [B, E*O] -> [E, B, O]: cheap XLA reshape/transpose (O < 128 here).
    # TODO(synk): once O >= 128, emit [E, B, O] directly via a grid axis over E.
    weighted_outputs = out_slab[:, :EO].reshape(B, E, O).transpose(1, 0, 2)
    router_logits = out_slab[:, EO:EO + E]
    topk_indices = idx_wide[:, :top_k]
    return weighted_outputs, router_logits, topk_indices


# ---------------- Pure-JAX reference (for sanity check) ----------------

def moe_reference(x, w_router, b_router, w_experts, b_experts, top_k):
    logits = x @ w_router + b_router
    tk_l, tk_i = jax.lax.top_k(logits, top_k)
    E = w_router.shape[1]
    onehot = tk_i[..., None] == jnp.arange(E)[None, None, :]
    gate = jnp.sum(jnp.where(onehot, tk_l[..., None], 0.0), axis=1)   # [B, E]
    expert_out = jnp.maximum(
        jnp.einsum("bd,edo->ebo", x, w_experts) + b_experts, 0.0
    )                                                                 # [E, B, O]
    weighted = expert_out * jnp.transpose(gate)[:, :, None]
    return weighted, logits, tk_i.astype(jnp.int32)


# ---------------- Main ----------------

if __name__ == "__main__":
    B, D, O, E, TOP_K = 8, 32, 32, 4, 2

    key = jax.random.PRNGKey(0)
    kx, kwr, kbr, kwe, kbe = jax.random.split(key, 5)

    x = jax.random.normal(kx, (B, D), dtype=jnp.float32)
    w_router = jax.random.normal(kwr, (D, E), dtype=jnp.float32) * 0.1
    b_router = jax.random.normal(kbr, (1, E), dtype=jnp.float32) * 0.1
    w_experts = jax.random.normal(kwe, (E, D, O), dtype=jnp.float32) * 0.1
    b_experts = jax.random.normal(kbe, (E, 1, O), dtype=jnp.float32) * 0.1

    fwd = jax.jit(moe_forward, static_argnames=("top_k", "mxu_dtype"))

    # --- f32 MXU operands: strict check against the f32 reference ---
    out, logits, idx = fwd(x, w_router, b_router, w_experts, b_experts, top_k=TOP_K)
    jax.block_until_ready((out, logits, idx))

    ref_out, ref_logits, ref_idx = moe_reference(
        x, w_router, b_router, w_experts, b_experts, TOP_K)
    assert out.shape == (E, B, O)
    assert logits.shape == (B, E)
    assert idx.shape == (B, TOP_K)
    assert jnp.allclose(out, ref_out, atol=1e-5)
    assert jnp.allclose(logits, ref_logits, atol=1e-5)
    assert jnp.array_equal(idx, ref_idx)

    # --- bf16 MXU operands (production setting): checked against a reference
    #     computed from bf16-rounded matmul inputs (f32 accumulation). ---
    q = lambda a: a.astype(jnp.bfloat16).astype(jnp.float32)
    out_b, logits_b, idx_b = fwd(x, w_router, b_router, w_experts, b_experts,
                                 top_k=TOP_K, mxu_dtype=jnp.bfloat16)
    jax.block_until_ready((out_b, logits_b, idx_b))
    rb_out, rb_logits, rb_idx = moe_reference(
        q(x), q(w_router), b_router, q(w_experts), b_experts, TOP_K)
    assert jnp.allclose(out_b, rb_out, atol=1e-3)
    assert jnp.allclose(logits_b, rb_logits, atol=1e-3)
    assert jnp.array_equal(idx_b, rb_idx)

    print("KERNEL_OK")
</pallas_src>

<mosaic_0001>
module attributes {stable_mosaic.version = 11 : i64} {
  func.func @moe_fused_kernel(%arg0: i32, %arg1: memref<8x32xf32, #tpu.memory_space<vmem>>, %arg2: memref<32x256xf32, #tpu.memory_space<vmem>>, %arg3: memref<1x256xf32, #tpu.memory_space<vmem>>, %arg4: memref<8x256xf32, #tpu.memory_space<vmem>>, %arg5: memref<8x128xi32, #tpu.memory_space<vmem>>) attributes {dimension_semantics = [#tpu.dimension_semantics<parallel>], iteration_bounds = array<i64: 1>, scalar_prefetch = 0 : i64, scratch_operands = 0 : i64, tpu.core_type = #tpu.core_type<tc>, window_params = [{transform_indices = @transform_0, window_bounds = array<i64: 8, 32>}, {pipeline_mode = #tpu.pipeline_mode<synchronous>, transform_indices = @transform_1, window_bounds = array<i64: 32, 256>}, {pipeline_mode = #tpu.pipeline_mode<synchronous>, transform_indices = @transform_2, window_bounds = array<i64: 1, 256>}, {transform_indices = @transform_3, window_bounds = array<i64: 8, 256>}, {transform_indices = @transform_4, window_bounds = array<i64: 8, 128>}]} {
    %c0 = arith.constant 0 : index
    %c0_0 = arith.constant 0 : index
    %0 = vector.load %arg1[%c0, %c0_0] : memref<8x32xf32, #tpu.memory_space<vmem>>, vector<8x32xf32>
    %c0_1 = arith.constant 0 : index
    %c0_2 = arith.constant 0 : index
    %1 = vector.load %arg2[%c0_1, %c0_2] : memref<32x256xf32, #tpu.memory_space<vmem>>, vector<32x256xf32>
    %cst = arith.constant dense<0.000000e+00> : vector<8x256xf32>
    %2 = tpu.matmul %0, %1, %cst {dimension_numbers = #tpu.dot_dimension_numbers<[1], [0], [0], [1], [0, 0, 1, 1], [], []>} : vector<8x32xf32>, vector<32x256xf32>, vector<8x256xf32> -> vector<8x256xf32>
    %c0_3 = arith.constant 0 : index
    %c0_4 = arith.constant 0 : index
    %3 = vector.load %arg3[%c0_3, %c0_4] : memref<1x256xf32, #tpu.memory_space<vmem>>, vector<1x256xf32>
    %4 = vector.broadcast %3 : vector<1x256xf32> to vector<8x256xf32>
    %5 = arith.addf %2, %4 : vector<8x256xf32>
    %6 = tpu.iota {dimensions = array<i32: 1>} : vector<8x256xi32>
    %c128_i32 = arith.constant 128 : i32
    %7 = vector.broadcast %c128_i32 : i32 to vector<8x256xi32>
    %8 = arith.cmpi slt, %6, %7 : vector<8x256xi32>
    %9 = vector.extract_strided_slice %5 {offsets = [0, 128], sizes = [8, 128], strides = [1, 1]} : vector<8x256xf32> to vector<8x128xf32>
    %10 = tpu.iota {dimensions = array<i32: 1>} : vector<8x128xi32>
    %c4_i32 = arith.constant 4 : i32
    %11 = vector.broadcast %c4_i32 : i32 to vector<8x128xi32>
    %12 = arith.cmpi slt, %10, %11 : vector<8x128xi32>
    %cst_5 = arith.constant -3.40282347E+38 : f32
    %13 = vector.broadcast %cst_5 : f32 to vector<8x128xf32>
    %14 = arith.select %12, %9, %13 : vector<8x128xi1>, vector<8x128xf32>
    %cst_6 = arith.constant 0.000000e+00 : f32
    %cst_7 = arith.constant 1.000000e+00 : f32
    %15 = vector.broadcast %cst_6 : f32 to vector<8x256xf32>
    %16 = vector.broadcast %cst_7 : f32 to vector<8x256xf32>
    %17 = arith.select %8, %15, %16 : vector<8x256xi1>, vector<8x256xf32>
    %c-1_i32 = arith.constant -1 : i32
    %18 = vector.broadcast %c-1_i32 : i32 to vector<8x128xi32>
    %19 = tpu.iota {dimensions = array<i32: 1>} : vector<8x128xi32>
    %cst_8 = arith.constant dense<0xFF800000> : vector<8xf32>
    %20 = vector.multi_reduction <maximumf>, %14, %cst_8 [1] : vector<8x128xf32> to vector<8xf32>
    %21 = vector.shape_cast %20 : vector<8xf32> to vector<8x1xf32>
    %22 = vector.broadcast %21 : vector<8x1xf32> to vector<8x128xf32>
    %23 = arith.cmpf oeq, %14, %22 : vector<8x128xf32>
    %c128_i32_9 = arith.constant 128 : i32
    %24 = vector.broadcast %c128_i32_9 : i32 to vector<8x128xi32>
    %25 = arith.select %23, %10, %24 : vector<8x128xi1>, vector<8x128xi32>
    %cst_10 = arith.constant dense<2147483647> : vector<8xi32>
    %26 = vector.multi_reduction <minsi>, %25, %cst_10 [1] : vector<8x128xi32> to vector<8xi32>
    %27 = vector.shape_cast %26 : vector<8xi32> to vector<8x1xi32>
    %c32_i32 = arith.constant 32 : i32
    %28 = vector.broadcast %c32_i32 : i32 to vector<8x1xi32>
    %29 = arith.muli %27, %28 : vector<8x1xi32>
    %30 = vector.broadcast %29 : vector<8x1xi32> to vector<8x256xi32>
    %31 = arith.cmpi sge, %6, %30 : vector<8x256xi32>
    %c32_i32_11 = arith.constant 32 : i32
    %32 = vector.broadcast %c32_i32_11 : i32 to vector<8x1xi32>
    %33 = arith.addi %29, %32 : vector<8x1xi32>
    %34 = vector.broadcast %33 : vector<8x1xi32> to vector<8x256xi32>
    %35 = arith.cmpi slt, %6, %34 : vector<8x256xi32>
    %36 = arith.andi %31, %35 : vector<8x256xi1>
    %cst_12 = arith.constant 0.000000e+00 : f32
    %37 = vector.shape_cast %21 : vector<8x1xf32> to vector<8x1xf32>
    %38 = vector.broadcast %37 : vector<8x1xf32> to vector<8x256xf32>
    %39 = vector.broadcast %cst_12 : f32 to vector<8x256xf32>
    %40 = arith.select %36, %38, %39 : vector<8x256xi1>, vector<8x256xf32>
    %41 = arith.addf %17, %40 : vector<8x256xf32>
    %42 = vector.broadcast %27 : vector<8x1xi32> to vector<8x128xi32>
    %43 = arith.cmpi eq, %10, %42 : vector<8x128xi32>
    %cst_13 = arith.constant -3.40282347E+38 : f32
    %44 = vector.broadcast %cst_13 : f32 to vector<8x128xf32>
    %45 = arith.select %43, %44, %14 : vector<8x128xi1>, vector<8x128xf32>
    %c0_i32 = arith.constant 0 : i32
    %46 = vector.broadcast %c0_i32 : i32 to vector<8x128xi32>
    %47 = arith.cmpi eq, %19, %46 : vector<8x128xi32>
    %48 = vector.shape_cast %27 : vector<8x1xi32> to vector<8x1xi32>
    %49 = vector.broadcast %48 : vector<8x1xi32> to vector<8x128xi32>
    %50 = arith.select %47, %49, %18 : vector<8x128xi1>, vector<8x128xi32>
    %cst_14 = arith.constant dense<0xFF800000> : vector<8xf32>
    %51 = vector.multi_reduction <maximumf>, %45, %cst_14 [1] : vector<8x128xf32> to vector<8xf32>
    %52 = vector.shape_cast %51 : vector<8xf32> to vector<8x1xf32>
    %53 = vector.broadcast %52 : vector<8x1xf32> to vector<8x128xf32>
    %54 = arith.cmpf oeq, %45, %53 : vector<8x128xf32>
    %c128_i32_15 = arith.constant 128 : i32
    %55 = vector.broadcast %c128_i32_15 : i32 to vector<8x128xi32>
    %56 = arith.select %54, %10, %55 : vector<8x128xi1>, vector<8x128xi32>
    %cst_16 = arith.constant dense<2147483647> : vector<8xi32>
    %57 = vector.multi_reduction <minsi>, %56, %cst_16 [1] : vector<8x128xi32> to vector<8xi32>
    %58 = vector.shape_cast %57 : vector<8xi32> to vector<8x1xi32>
    %c32_i32_17 = arith.constant 32 : i32
    %59 = vector.broadcast %c32_i32_17 : i32 to vector<8x1xi32>
    %60 = arith.muli %58, %59 : vector<8x1xi32>
    %61 = vector.broadcast %60 : vector<8x1xi32> to vector<8x256xi32>
    %62 = arith.cmpi sge, %6, %61 : vector<8x256xi32>
    %c32_i32_18 = arith.constant 32 : i32
    %63 = vector.broadcast %c32_i32_18 : i32 to vector<8x1xi32>
    %64 = arith.addi %60, %63 : vector<8x1xi32>
    %65 = vector.broadcast %64 : vector<8x1xi32> to vector<8x256xi32>
    %66 = arith.cmpi slt, %6, %65 : vector<8x256xi32>
    %67 = arith.andi %62, %66 : vector<8x256xi1>
    %cst_19 = arith.constant 0.000000e+00 : f32
    %68 = vector.shape_cast %52 : vector<8x1xf32> to vector<8x1xf32>
    %69 = vector.broadcast %68 : vector<8x1xf32> to vector<8x256xf32>
    %70 = vector.broadcast %cst_19 : f32 to vector<8x256xf32>
    %71 = arith.select %67, %69, %70 : vector<8x256xi1>, vector<8x256xf32>
    %72 = arith.addf %41, %71 : vector<8x256xf32>
    %c1_i32 = arith.constant 1 : i32
    %73 = vector.broadcast %c1_i32 : i32 to vector<8x128xi32>
    %74 = arith.cmpi eq, %19, %73 : vector<8x128xi32>
    %75 = vector.shape_cast %58 : vector<8x1xi32> to vector<8x1xi32>
    %76 = vector.broadcast %75 : vector<8x1xi32> to vector<8x128xi32>
    %77 = arith.select %74, %76, %50 : vector<8x128xi1>, vector<8x128xi32>
    %cst_20 = arith.constant 0.000000e+00 : f32
    %78 = vector.broadcast %cst_20 : f32 to vector<8x256xf32>
    %79 = arith.maximumf %5, %78 : vector<8x256xf32>
    %80 = arith.select %8, %79, %5 : vector<8x256xi1>, vector<8x256xf32>
    %81 = arith.mulf %80, %72 : vector<8x256xf32>
    %c0_21 = arith.constant 0 : index
    %c0_22 = arith.constant 0 : index
    %82 = vector.load %arg4[%c0_21, %c0_22] : memref<8x256xf32, #tpu.memory_space<vmem>>, vector<8x256xf32>
    tpu.vector_store %arg4[%c0_21, %c0_22], %81 {strides = array<i32>} : memref<8x256xf32, #tpu.memory_space<vmem>>, vector<8x256xf32>,
    %c0_23 = arith.constant 0 : index
    %c0_24 = arith.constant 0 : index
    %83 = vector.load %arg5[%c0_23, %c0_24] : memref<8x128xi32, #tpu.memory_space<vmem>>, vector<8x128xi32>
    tpu.vector_store %arg5[%c0_23, %c0_24], %77 {strides = array<i32>} : memref<8x128xi32, #tpu.memory_space<vmem>>, vector<8x128xi32>,
    return
  }
  func.func @transform_0(%arg0: i32) -> (i32, i32) {
    %c0_i32 = arith.constant 0 : i32
    %c0_i32_0 = arith.constant 0 : i32
    return %arg0, %c0_i32 : i32, i32
  }
  func.func @transform_1(%arg0: i32) -> (i32, i32) {
    %c0_i32 = arith.constant 0 : i32
    %c0_i32_0 = arith.constant 0 : i32
    %c0_i32_1 = arith.constant 0 : i32
    return %c0_i32, %c0_i32_0 : i32, i32
  }
  func.func @transform_2(%arg0: i32) -> (i32, i32) {
    %c0_i32 = arith.constant 0 : i32
    %c0_i32_0 = arith.constant 0 : i32
    %c0_i32_1 = arith.constant 0 : i32
    return %c0_i32, %c0_i32_0 : i32, i32
  }
  func.func @transform_3(%arg0: i32) -> (i32, i32) {
    %c0_i32 = arith.constant 0 : i32
    %c0_i32_0 = arith.constant 0 : i32
    return %arg0, %c0_i32 : i32, i32
  }
  func.func @transform_4(%arg0: i32) -> (i32, i32) {
    %c0_i32 = arith.constant 0 : i32
    %c0_i32_0 = arith.constant 0 : i32
    return %arg0, %c0_i32 : i32, i32
  }
}

</mosaic_0001>

<bundles_post_ra>
// kernel: moe_forward.1
= control target key start
LH: loop header
LB: loop body
LE: loop exit
PB: predicated region body
PF: predicated region fallthrough
CT: control target
= control target key end

     0   :  { %vm31_vm0 = vcmask 261120   ;;  %v75_v5 = vlaneseq  ;;  %s261_s1 = inlined_call_operand.vmem [shape: f32[32,256], index: 1, kind: input, shape index: {}]   ;;  %s262_s0 = inlined_call_operand.vmem [shape: f32[8,32], index: 0, kind: input, shape index: {}]   ;;  %s263_s2 = inlined_call_operand.vmem [shape: f32[1,256], index: 2, kind: input, shape index: {}]   ;;  %s264_s4 = inlined_call_operand.vmem [shape: s32[8,128], index: 4, kind: output, shape index: {1}]   ;;  %s265_s3 = inlined_call_operand.vmem [shape: f32[8,256], index: 3, kind: output, shape index: {0}]  }
   0x1   :  { %v24_v0 = vld [vmem:[%s261_s1 + $0x38] sm:$0xff]  ;;  %v22_v1 = vld [vmem:[%s261_s1 + $0x28] sm:$0xff]  ;;  %v16_v4 = vld [vmem:[%s262_s0] sm:$0xff] }
   0x2   :  { %67 = vmatpush.msra.mxu1 %v24_v0  ;;  %v20_v2 = vld [vmem:[%s261_s1 + $0x18] sm:$0xff]  ;;  %v18_v3 = vld [vmem:[%s261_s1 + $0x8] sm:$0xff]  ;;  %v213_v6 = vld [vmem:[%s263_s2] sm:$0x3]  ;;  %v215_v7 = vand.u32 127, %v75_v5 }
   0x3   :  { %v28_v8 = vperm.slane %v213_v6, 1  ;;  %v23_v26 = vld [vmem:[%s261_s1 + $0x30] sm:$0xff]  ;;  %v21_v27 = vld [vmem:[%s261_s1 + $0x20] sm:$0xff]  ;;  %v27_v46 = vperm.slane %v213_v6, 0 }
   0x4   :  { %68 = vmatpush.msra.mxu1 %v22_v1  ;;  %vm80_vm1 = vcmp.lt.s32.totalorder %v215_v7, 4  ;;  %47 = vmatpush.msra.mxu0 %v23_v26  ;;  %v19_v28 = vld [vmem:[%s261_s1 + $0x10] sm:$0xff]  ;;  %v17_v33 = vld [vmem:[%s261_s1] sm:$0xff]  ;;  %v77_v41 = vadd.s32 128, %v215_v7  ;;  %vm116_vm7 = vcmp.eq.s32.totalorder %v215_v7, 0  ;;  %vm148_vm9 = vcmp.eq.s32.totalorder %v215_v7, 1 }
   0x6   :  { %69 = vmatpush.msra.mxu1 %v20_v2  ;;  %48 = vmatpush.msra.mxu0 %v21_v27 }
   0x8   :  { %70 = vmatpush.msra.mxu1 %v18_v3  ;;  %49 = vmatpush.msra.mxu0 %v19_v28 }
   0x9   :  { %168 = vmatmul.msk.f32.vlgmr.msra.gmra.mxu1 %vm31_vm0, %v16_v4 }
   0xa   :  { %50 = vmatpush.msra.mxu0 %v17_v33 }
   0xb   :  { %167 = vmatmul.msk.f32.vlgmr.msra.gmra.mxu0 %vm31_vm0, %v16_v4 }
  0x86   :  { %v72_v9 = vpop.f32.mrf.mxu1 }
  0x87   :  { %v219_v10 = vadd.f32 %v72_v9, %v28_v8 }
  0x88   :  { %v52_v48 = vpop.f32.mrf.mxu0 }
  0x89   :  { %v81_v11 = vsel %vm80_vm1, %v219_v10, -3.4028235e+38  ;;  %v53_v52 = vadd.f32 %v52_v48, %v27_v46 }
  0x8a   :  { %84 = vmax.xlane.f32.xlu0 %v81_v11 }
  0x8b   :  { %v150_v56 = vmax.f32 %v53_v52, 0.0 }
  0xfd   :  { %v222_v12 = vpop.xlane.xlu0 %84 }
  0xfe   :  { %vm86_vm2 = vcmp.eq.f32.partialorder %v81_v11, %v222_v12 }
  0xff   :  { %v87_v13 = vsel %vm86_vm2, %v215_v7, 128 }
 0x100   :  { %v89_v14 = vshra.s32 %v87_v13, 16  ;;  %v88_v16 = vand.u32 65535, %v87_v13 }
 0x102   :  { %v91_v15 = vcvt.s32.f32 %v89_v14  ;;  %v90_v18 = vcvt.s32.f32 %v88_v16 }
 0x104   :  { %92 = vmin.xlane.f32.xlu0 %v91_v15 }
 0x177   :  { %v93_v17 = vpop.xlane.xlu0 %92 }
 0x178   :  { %vm94_vm3 = vcmp.eq.f32.partialorder %v91_v15, %v93_v17  ;;  %v99_v20 = vcvt.f32.s32 %v93_v17 }
 0x179   :  { %v95_v19 = vsel %vm94_vm3, %v90_v18, inf }
 0x17a   :  { %96 = vmin.xlane.f32.xlu1 %v95_v19  ;;  %v100_v22 = vshll.u32 %v99_v20, 16 }
 0x1ed   :  { %v97_v21 = vpop.xlane.xlu1 %96 }
 0x1ee   :  { %v98_v23 = vcvt.f32.s32 %v97_v21 }
 0x1f0   :  { %v101_v24 = vadd.s32 %v100_v22, %v98_v23 }
 0x1f2   :  { %vm114_vm4 = vcmp.eq.s32.totalorder %v215_v7, %v101_v24  ;;  %v102_v38 = vmul.u32 32, %v101_v24  ;;  %v117_v47 = vsel %vm116_vm7, %v101_v24, 4294967295 }
 0x1f3   :  { %v115_v25 = vsel %vm114_vm4, -3.4028235e+38, %v81_v11 }
 0x1f4   :  { %118 = vmax.xlane.f32.xlu1 %v115_v25  ;;  %v105_v40 = vadd.s32 32, %v102_v38  ;;  %vm104_vm10 = vcmp.ge.s32.totalorder %v77_v41, %v102_v38  ;;  %vm103_vm13 = vcmp.ge.s32.totalorder %v215_v7, %v102_v38 }
 0x1f6   :  { %vm107_vm8 = vcmp.lt.s32.totalorder %v77_v41, %v105_v40  ;;  %vm106_vm12 = vcmp.lt.s32.totalorder %v215_v7, %v105_v40 }
 0x1f7   :  { %vm109_vm11 = vmand %vm104_vm10, %vm107_vm8 }
 0x1f8   :  { %v111_v53 = vsel %vm109_vm11, %v222_v12, 0.0  ;;  %vm108_vm0 = vmand %vm103_vm13, %vm106_vm12 }
 0x1f9   :  { %v113_v54 = vadd.f32 1.0, %v111_v53  ;;  %v110_v57 = vsel %vm108_vm0, %v222_v12, 0.0 }
 0x267   :  { %v119_v29 = vpop.xlane.xlu1 %118 }
 0x268   :  { %vm120_vm5 = vcmp.eq.f32.partialorder %v115_v25, %v119_v29 }
 0x269   :  { %v121_v30 = vsel %vm120_vm5, %v215_v7, 128 }
 0x26a   :  { %v123_v31 = vshra.s32 %v121_v30, 16  ;;  %v122_v34 = vand.u32 65535, %v121_v30 }
 0x26c   :  { %v125_v32 = vcvt.s32.f32 %v123_v31  ;;  %v124_v36 = vcvt.s32.f32 %v122_v34 }
 0x26e   :  { %126 = vmin.xlane.f32.xlu2 %v125_v32 }
 0x2e1   :  { %v127_v35 = vpop.xlane.xlu2 %126 }
 0x2e2   :  { %vm128_vm6 = vcmp.eq.f32.partialorder %v125_v32, %v127_v35  ;;  %v133_v39 = vcvt.f32.s32 %v127_v35 }
 0x2e3   :  { %v129_v37 = vsel %vm128_vm6, %v124_v36, inf }
 0x2e4   :  { %130 = vmin.xlane.f32.xlu2 %v129_v37  ;;  %v134_v43 = vshll.u32 %v133_v39, 16 }
 0x357   :  { %v131_v42 = vpop.xlane.xlu2 %130 }
 0x358   :  { %v132_v44 = vcvt.f32.s32 %v131_v42 }
 0x35a   :  { %v135_v45 = vadd.s32 %v134_v43, %v132_v44 }
 0x35c   :  { %v136_v49 = vmul.u32 32, %v135_v45  ;;  %v149_v50 = vsel %vm148_vm9, %v135_v45, %v117_v47 }
 0x35d   :  { %158 = vst [vmem:[%s264_s4] sm:$0xff] %v149_v50 }
 0x35e   :  { %v139_v51 = vadd.s32 32, %v136_v49  ;;  %vm138_vm14 = vcmp.ge.s32.totalorder %v77_v41, %v136_v49  ;;  %vm137_vm3 = vcmp.ge.s32.totalorder %v215_v7, %v136_v49 }
 0x360   :  { %vm141_vm15 = vcmp.lt.s32.totalorder %v77_v41, %v139_v51  ;;  %vm140_vm1 = vcmp.lt.s32.totalorder %v215_v7, %v139_v51 }
 0x361   :  { %vm143_vm2 = vmand %vm138_vm14, %vm141_vm15 }
 0x362   :  { %v145_v55 = vsel %vm143_vm2, %v119_v29, 0.0  ;;  %vm142_vm4 = vmand %vm137_vm3, %vm140_vm1 }
 0x363   :  { %v144_v58 = vsel %vm142_vm4, %v119_v29, 0.0  ;;  %v147_v59 = vadd.f32 %v145_v55, %v113_v54 }
 0x364   :  { %v146_v60 = vadd.f32 %v144_v58, %v110_v57 }
 0x365   :  { %v155_v61 = vmul.f32 %v147_v59, %v219_v10 }
 0x366   :  { %v154_v62 = vmul.f32 %v150_v56, %v146_v60 }
 0x367   :  { %157 = vst [vmem:[%s265_s3 + $0x8] sm:$0xff] %v155_v61 }
 0x368   :  { %156 = vst [vmem:[%s265_s3] sm:$0xff] %v154_v62 }

</bundles_post_ra>
